<compile_context>
chip_gen: v7x
topology: tpu7x:2x2x1
jax: 0.10.0
libtpu: 0.0.40
codegen_flags: <defaults>
</compile_context>

<pallas_src>
import jax
import jax.numpy as jnp
from jax.experimental import pallas as pl
from jax.experimental.pallas import tpu as pltpu


# -----------------------------------------------------------------------------
# stride == 1: lane-dense kernel, per-image layout (C, H*W) with H*W in lanes.
# -----------------------------------------------------------------------------
def _make_kernel_s1(nb, C_in, C_hid, C_out, H, W, use_res):
    HW = H * W
    PAD = 128  # lane-aligned zero pad on each side of the flattened spatial axis

    def kernel(x_ref, w1_ref, sh1_ref, dw_ref, sh2_ref, w3_ref, sh3_ref, o_ref):
        # Weights / biases: load once per grid step, reused for all nb images.
        w1m = w1_ref[...]          # (C_in,  C_hid, 1)
        dwm = dw_ref[...]          # (9,     C_hid, 1)
        w3m = w3_ref[...]          # (C_hid, C_out, 1)
        sh1 = sh1_ref[...]         # (C_hid, 1)
        sh2 = sh2_ref[...]         # (C_hid, 1)
        sh3 = sh3_ref[...]         # (C_out, 1)

        # Column (x) index of every flattened spatial position, used to mask the
        # horizontal wrap of shifted windows.  Hoisted out of all loops.
        col = jax.lax.broadcasted_iota(jnp.int32, (1, HW), 1) % W
        ok_l = col >= 1            # column x-1 exists  (dx == -1 taps)
        ok_r = col < (W - 1)       # column x+1 exists  (dx == +1 taps)
        zpad = jnp.zeros((C_hid, PAD), jnp.float32)

        for i in range(nb):
            x = x_ref[i].astype(jnp.float32)                # (C_in, HW)

            # ---- 1x1 expand + BN + ReLU6: VPU broadcast-MACs over C_in -------
            # (K = C_in is tiny; an MXU matmul here is pure overhead.)
            h = jnp.zeros((C_hid, HW), jnp.float32)
            for c in range(C_in):
                h = h + w1m[c] * x[c:c + 1, :]              # (C_hid,1)*(1,HW)
            h = jnp.clip(h + sh1, 0.0, 6.0)

            # ---- 3x3 depthwise (stride 1, pad 1) + BN + ReLU6 ----------------
            # Shifted windows of a single lane-aligned zero-padded flat copy.
            # Row boundaries are handled by the zero pad, column boundaries by
            # the precomputed masks (no (H+2, W+2, C) padded tensor).
            hp = jnp.concatenate([zpad, h, zpad], axis=1)   # (C_hid, PAD+HW+PAD)
            acc = dwm[4] * h                                # centre tap
            for k in range(9):
                if k == 4:
                    continue
                dy, dx = k // 3 - 1, k % 3 - 1
                start = PAD + dy * W + dx
                win = hp[:, start:start + HW]               # (C_hid, HW)
                if dx == -1:
                    win = jnp.where(ok_l, win, 0.0)
                elif dx == 1:
                    win = jnp.where(ok_r, win, 0.0)
                acc = acc + dwm[k] * win
            g = jnp.clip(acc + sh2, 0.0, 6.0)

            # ---- 1x1 project + BN: VPU broadcast-MACs over C_hid -------------
            y = jnp.zeros((C_out, HW), jnp.float32)
            for c in range(C_hid):
                y = y + w3m[c] * g[c:c + 1, :]
            y = y + sh3
            if use_res:
                y = y + x                                   # residual connection
            o_ref[i] = y.astype(o_ref.dtype)

    return kernel


def _inverted_residual_s1(x_nchw, w1f, sh1, dwf, sh2, w3f, sh3, use_res):
    N, C_in, H, W = x_nchw.shape
    C_hid = w1f.shape[0]
    C_out = w3f.shape[0]
    HW = H * W

    # Images per grid step: keep >= 2 grid steps (one per v7x TensorCore) while
    # folding several images into one step for larger batches to amortise the
    # per-step pipeline overhead.  Per-image VMEM footprint is only a few KiB,
    # far below the 32 MiB scoped default (and v7x's 64 MiB physical VMEM).
    nb = N // 2 if (N % 2 == 0 and N > 2) else 1

    # Native NCHW -> (N, C, H*W): contiguous reshape only, no transpose/HBM pass.
    x3 = x_nchw.reshape(N, C_in, HW)

    # Weights in the broadcast-ready column shapes the kernel consumes.
    w1k = jnp.transpose(w1f, (1, 0))[:, :, None]                      # (C_in,  C_hid, 1)
    dwk = jnp.transpose(dwf.reshape(C_hid, 9), (1, 0))[:, :, None]    # (9,     C_hid, 1)
    w3k = jnp.transpose(w3f, (1, 0))[:, :, None]                      # (C_hid, C_out, 1)
    sh1k = sh1.reshape(C_hid, 1)
    sh2k = sh2.reshape(C_hid, 1)
    sh3k = sh3.reshape(C_out, 1)

    kernel = _make_kernel_s1(nb, C_in, C_hid, C_out, H, W, use_res)
    out = pl.pallas_call(
        kernel,
        out_shape=jax.ShapeDtypeStruct((N, C_out, HW), x_nchw.dtype),
        grid_spec=pltpu.PrefetchScalarGridSpec(
            num_scalar_prefetch=0,
            grid=(N // nb,),
            in_specs=[
                pl.BlockSpec((nb, C_in, HW), lambda n: (n, 0, 0)),
                pl.BlockSpec((C_in, C_hid, 1), lambda n: (0, 0, 0)),
                pl.BlockSpec((C_hid, 1), lambda n: (0, 0)),
                pl.BlockSpec((9, C_hid, 1), lambda n: (0, 0, 0)),
                pl.BlockSpec((C_hid, 1), lambda n: (0, 0)),
                pl.BlockSpec((C_hid, C_out, 1), lambda n: (0, 0, 0)),
                pl.BlockSpec((C_out, 1), lambda n: (0, 0)),
            ],
            out_specs=pl.BlockSpec((nb, C_out, HW), lambda n: (n, 0, 0)),
        ),
        compiler_params=pltpu.CompilerParams(
            dimension_semantics=("parallel",)),
    )(x3, w1k, sh1k, dwk, sh2k, w3k, sh3k)
    return out.reshape(N, C_out, H, W)


# -----------------------------------------------------------------------------
# stride == 2 fallback: channel-minor NHWC layout (proven lowering), with the
# per-tap even-position subsampling so only Ho*Wo positions are accumulated.
# TODO(synk): lane-densify the stride-2 path like the stride-1 kernel.
# -----------------------------------------------------------------------------
def _make_kernel_s2(H, W, C_in, C_hid, C_out):
    Ho, Wo = H // 2, W // 2

    def kernel(x_ref, w1_ref, sh1_ref, dw_ref, sh2_ref, w3_ref, sh3_ref, o_ref):
        x = x_ref[0]                                        # (H, W, C_in)
        h = jnp.dot(x.reshape(H * W, C_in), w1_ref[...],
                    preferred_element_type=jnp.float32)
        h = jnp.clip(h + sh1_ref[...], 0.0, 6.0).reshape(H, W, C_hid)

        zrow = jnp.zeros((1, W, C_hid), h.dtype)
        zcol = jnp.zeros((H + 2, 1, C_hid), h.dtype)
        hp = jnp.concatenate([zrow, h, zrow], axis=0)
        hp = jnp.concatenate([zcol, hp, zcol], axis=1)      # (H+2, W+2, C_hid)

        dwm = dw_ref[...]                                   # (9, C_hid), hoisted
        acc = jnp.zeros((Ho, Wo, C_hid), jnp.float32)
        for ky in range(3):
            for kx in range(3):
                win = hp[ky:ky + H, kx:kx + W, :]
                # keep only the even (y, x) positions *before* the MAC
                win = win.reshape(Ho, 2, Wo, 2, C_hid)[:, 0, :, 0, :]
                acc = acc + win * dwm[ky * 3 + kx]
        acc = jnp.clip(acc + sh2_ref[...], 0.0, 6.0)

        y = jnp.dot(acc.reshape(Ho * Wo, C_hid), w3_ref[...],
                    preferred_element_type=jnp.float32)
        y = (y + sh3_ref[...]).reshape(Ho, Wo, C_out)
        o_ref[0] = y.astype(o_ref.dtype)

    return kernel, Ho, Wo


def _inverted_residual_s2(x_nchw, w1f, sh1, dwf, sh2, w3f, sh3):
    N, C_in, H, W = x_nchw.shape
    assert H % 2 == 0 and W % 2 == 0, "stride-2 path assumes even H and W"
    C_hid = w1f.shape[0]
    C_out = w3f.shape[0]
    kernel, Ho, Wo = _make_kernel_s2(H, W, C_in, C_hid, C_out)

    x_nhwc = jnp.transpose(x_nchw, (0, 2, 3, 1))
    out = pl.pallas_call(
        kernel,
        out_shape=jax.ShapeDtypeStruct((N, Ho, Wo, C_out), x_nchw.dtype),
        grid_spec=pltpu.PrefetchScalarGridSpec(
            num_scalar_prefetch=0,
            grid=(N,),
            in_specs=[
                pl.BlockSpec((1, H, W, C_in), lambda n: (n, 0, 0, 0)),
                pl.BlockSpec((C_in, C_hid), lambda n: (0, 0)),
                pl.BlockSpec((1, C_hid), lambda n: (0, 0)),
                pl.BlockSpec((9, C_hid), lambda n: (0, 0)),
                pl.BlockSpec((1, C_hid), lambda n: (0, 0)),
                pl.BlockSpec((C_hid, C_out), lambda n: (0, 0)),
                pl.BlockSpec((1, C_out), lambda n: (0, 0)),
            ],
            out_specs=pl.BlockSpec((1, Ho, Wo, C_out), lambda n: (n, 0, 0, 0)),
        ),
        compiler_params=pltpu.CompilerParams(
            dimension_semantics=("parallel",)),
    )(x_nhwc, jnp.transpose(w1f, (1, 0)), sh1.reshape(1, C_hid),
      jnp.transpose(dwf.reshape(C_hid, 9), (1, 0)), sh2.reshape(1, C_hid),
      jnp.transpose(w3f, (1, 0)), sh3.reshape(1, C_out))
    return jnp.transpose(out, (0, 3, 1, 2))


# -----------------------------------------------------------------------------
# Public entry point (NCHW in, NCHW out, like the PyTorch module).
# -----------------------------------------------------------------------------
def inverted_residual_pallas(x_nchw, w1f, sh1, dwf, sh2, w3f, sh3, stride):
    """Eval-mode InvertedResidual forward with BatchNorm pre-folded.

    x_nchw : (N, C_in, H, W) float32 (PyTorch NCHW layout).
    w1f    : (C_hid, C_in)   folded 1x1 expand weight.
    dwf    : (C_hid, 3, 3)   folded 3x3 depthwise weight.
    w3f    : (C_out, C_hid)  folded 1x1 project weight.
    sh1/2/3: per-channel folded bias/shift for each stage.
    """
    assert stride in (1, 2)
    C_in = x_nchw.shape[1]
    C_out = w3f.shape[0]
    if stride == 1:
        use_res = (C_in == C_out)
        return _inverted_residual_s1(x_nchw, w1f, sh1, dwf, sh2, w3f, sh3, use_res)
    return _inverted_residual_s2(x_nchw, w1f, sh1, dwf, sh2, w3f, sh3)


def _fold_bn(gamma, beta, mean, var, conv_bias, eps=1e-5):
    """Fold eval-mode BatchNorm into a per-output-channel (scale, shift)."""
    s = gamma / jnp.sqrt(var + eps)
    shift = s * (conv_bias - mean) + beta
    return s, shift


def _reference(x, w1f, sh1, dwf, sh2, w3f, sh3, stride):
    """Pure-JAX NCHW reference with the same folded parameters."""
    hi = jax.lax.Precision.HIGHEST
    C_hid = w1f.shape[0]
    C_out = w3f.shape[0]
    h = jnp.einsum('oc,nchw->nohw', w1f, x, precision=hi)
    h = jnp.clip(h + sh1[None, :, None, None], 0.0, 6.0)
    g = jax.lax.conv_general_dilated(
        h, dwf.reshape(C_hid, 1, 3, 3),
        window_strides=(stride, stride), padding=((1, 1), (1, 1)),
        feature_group_count=C_hid,
        dimension_numbers=('NCHW', 'OIHW', 'NCHW'), precision=hi)
    g = jnp.clip(g + sh2[None, :, None, None], 0.0, 6.0)
    y = jnp.einsum('oc,nchw->nohw', w3f, g, precision=hi)
    y = y + sh3[None, :, None, None]
    if stride == 1 and x.shape[1] == C_out:
        y = y + x
    return y


if __name__ == "__main__":
    # Module config: InvertedResidual(inp=4, oup=4, stride=1, expand_ratio=2)
    N, C_in, H, W = 2, 4, 16, 16
    C_out = 4
    stride = 1
    expand_ratio = 2
    C_hid = C_in * expand_ratio

    key = jax.random.PRNGKey(0)
    ks = jax.random.split(key, 16)

    # Input in the module's native NCHW convention.
    x = jax.random.normal(ks[0], (N, C_in, H, W), jnp.float32)

    # ---- Deterministic parameter init (conv + BN per stage) ----
    # Stage 1: 1x1 conv  inp -> hid
    w1_t = 0.1 * jax.random.normal(ks[1], (C_hid, C_in), jnp.float32)
    b1 = 0.1 * jax.random.normal(ks[2], (C_hid,), jnp.float32)
    g1 = 1.0 + 0.1 * jax.random.normal(ks[3], (C_hid,), jnp.float32)
    be1 = 0.1 * jax.random.normal(ks[4], (C_hid,), jnp.float32)
    m1 = 0.1 * jax.random.normal(ks[5], (C_hid,), jnp.float32)
    v1 = 0.5 + jnp.abs(jax.random.normal(ks[6], (C_hid,), jnp.float32))

    # Stage 2: 3x3 depthwise conv
    dw_t = 0.1 * jax.random.normal(ks[7], (C_hid, 3, 3), jnp.float32)
    b2 = 0.1 * jax.random.normal(ks[8], (C_hid,), jnp.float32)
    g2 = 1.0 + 0.1 * jax.random.normal(ks[9], (C_hid,), jnp.float32)
    be2 = 0.1 * jax.random.normal(ks[10], (C_hid,), jnp.float32)
    m2 = 0.1 * jax.random.normal(ks[11], (C_hid,), jnp.float32)
    v2 = 0.5 + jnp.abs(jax.random.normal(ks[12], (C_hid,), jnp.float32))

    # Stage 3: 1x1 conv  hid -> oup
    w3_t = 0.1 * jax.random.normal(ks[13], (C_out, C_hid), jnp.float32)
    b3 = 0.1 * jax.random.normal(ks[14], (C_out,), jnp.float32)
    g3 = 1.0 + 0.1 * jax.random.normal(ks[15], (C_out,), jnp.float32)
    be3 = jnp.zeros((C_out,), jnp.float32)
    m3 = jnp.zeros((C_out,), jnp.float32)
    v3 = jnp.ones((C_out,), jnp.float32)

    # Fold eval-mode BN into conv weights / biases.
    sc1, sh1 = _fold_bn(g1, be1, m1, v1, b1)
    sc2, sh2 = _fold_bn(g2, be2, m2, v2, b2)
    sc3, sh3 = _fold_bn(g3, be3, m3, v3, b3)
    w1f = w1_t * sc1[:, None]              # (C_hid, C_in)
    dwf = dw_t * sc2[:, None, None]        # (C_hid, 3, 3)
    w3f = w3_t * sc3[:, None]              # (C_out, C_hid)

    # ---- Run Pallas kernel ----
    out = inverted_residual_pallas(x, w1f, sh1, dwf, sh2, w3f, sh3, stride)
    out = jax.block_until_ready(out)

    # ---- Check against pure-JAX reference ----
    ref = _reference(x, w1f, sh1, dwf, sh2, w3f, sh3, stride)
    assert out.shape == ref.shape
    max_err = float(jnp.max(jnp.abs(out - ref)))
    assert jnp.allclose(out, ref, rtol=1e-4, atol=1e-4), max_err

    print("KERNEL_OK")
</pallas_src>

<mosaic_0001>
module attributes {stable_mosaic.version = 11 : i64} {
  func.func @kernel(%arg0: i32, %arg1: memref<1x4x256xf32, #tpu.memory_space<vmem>>, %arg2: memref<4x8x1xf32, #tpu.memory_space<vmem>>, %arg3: memref<8x1xf32, #tpu.memory_space<vmem>>, %arg4: memref<9x8x1xf32, #tpu.memory_space<vmem>>, %arg5: memref<8x1xf32, #tpu.memory_space<vmem>>, %arg6: memref<8x4x1xf32, #tpu.memory_space<vmem>>, %arg7: memref<4x1xf32, #tpu.memory_space<vmem>>, %arg8: memref<1x4x256xf32, #tpu.memory_space<vmem>>) attributes {dimension_semantics = [#tpu.dimension_semantics<parallel>], iteration_bounds = array<i64: 2>, scalar_prefetch = 0 : i64, scratch_operands = 0 : i64, tpu.core_type = #tpu.core_type<tc>, window_params = [{transform_indices = @transform_0, window_bounds = array<i64: 1, 4, 256>}, {pipeline_mode = #tpu.pipeline_mode<synchronous>, transform_indices = @transform_1, window_bounds = array<i64: 4, 8, 1>}, {pipeline_mode = #tpu.pipeline_mode<synchronous>, transform_indices = @transform_2, window_bounds = array<i64: 8, 1>}, {pipeline_mode = #tpu.pipeline_mode<synchronous>, transform_indices = @transform_3, window_bounds = array<i64: 9, 8, 1>}, {pipeline_mode = #tpu.pipeline_mode<synchronous>, transform_indices = @transform_4, window_bounds = array<i64: 8, 1>}, {pipeline_mode = #tpu.pipeline_mode<synchronous>, transform_indices = @transform_5, window_bounds = array<i64: 8, 4, 1>}, {pipeline_mode = #tpu.pipeline_mode<synchronous>, transform_indices = @transform_6, window_bounds = array<i64: 4, 1>}, {transform_indices = @transform_7, window_bounds = array<i64: 1, 4, 256>}]} {
    %c0 = arith.constant 0 : index
    %c0_0 = arith.constant 0 : index
    %c0_1 = arith.constant 0 : index
    %0 = vector.load %arg2[%c0, %c0_0, %c0_1] : memref<4x8x1xf32, #tpu.memory_space<vmem>>, vector<4x8x1xf32>
    %c0_2 = arith.constant 0 : index
    %c0_3 = arith.constant 0 : index
    %c0_4 = arith.constant 0 : index
    %1 = vector.load %arg4[%c0_2, %c0_3, %c0_4] : memref<9x8x1xf32, #tpu.memory_space<vmem>>, vector<9x8x1xf32>
    %c0_5 = arith.constant 0 : index
    %c0_6 = arith.constant 0 : index
    %c0_7 = arith.constant 0 : index
    %2 = vector.load %arg6[%c0_5, %c0_6, %c0_7] : memref<8x4x1xf32, #tpu.memory_space<vmem>>, vector<8x4x1xf32>
    %c0_8 = arith.constant 0 : index
    %c0_9 = arith.constant 0 : index
    %3 = vector.load %arg3[%c0_8, %c0_9] : memref<8x1xf32, #tpu.memory_space<vmem>>, vector<8x1xf32>
    %c0_10 = arith.constant 0 : index
    %c0_11 = arith.constant 0 : index
    %4 = vector.load %arg5[%c0_10, %c0_11] : memref<8x1xf32, #tpu.memory_space<vmem>>, vector<8x1xf32>
    %c0_12 = arith.constant 0 : index
    %c0_13 = arith.constant 0 : index
    %5 = vector.load %arg7[%c0_12, %c0_13] : memref<4x1xf32, #tpu.memory_space<vmem>>, vector<4x1xf32>
    %6 = tpu.iota {dimensions = array<i32: 1>} : vector<1x256xi32>
    %c16_i32 = arith.constant 16 : i32
    %c0_i32 = arith.constant 0 : i32
    %7 = arith.cmpi eq, %c16_i32, %c0_i32 : i32
    %c1_i32 = arith.constant 1 : i32
    %8 = arith.select %7, %c1_i32, %c16_i32 : i32
    %9 = vector.broadcast %8 : i32 to vector<1x256xi32>
    %10 = arith.remsi %6, %9 : vector<1x256xi32>
    %c0_i32_14 = arith.constant 0 : i32
    %11 = vector.broadcast %c0_i32_14 : i32 to vector<1x256xi32>
    %12 = arith.cmpi ne, %10, %11 : vector<1x256xi32>
    %c0_i32_15 = arith.constant 0 : i32
    %13 = vector.broadcast %c0_i32_15 : i32 to vector<1x256xi32>
    %14 = arith.cmpi slt, %10, %13 : vector<1x256xi32>
    %c0_i32_16 = arith.constant 0 : i32
    %15 = arith.cmpi slt, %8, %c0_i32_16 : i32
    %16 = vector.broadcast %15 : i1 to vector<1x256xi1>
    %17 = vector.broadcast %16 : vector<1x256xi1> to vector<1x256xi1>
    %18 = arith.xori %14, %17 : vector<1x256xi1>
    %19 = arith.andi %18, %12 : vector<1x256xi1>
    %20 = vector.broadcast %8 : i32 to vector<1x256xi32>
    %21 = arith.addi %10, %20 : vector<1x256xi32>
    %22 = arith.select %19, %21, %10 : vector<1x256xi1>, vector<1x256xi32>
    %c1_i32_17 = arith.constant 1 : i32
    %23 = vector.broadcast %c1_i32_17 : i32 to vector<1x256xi32>
    %24 = arith.cmpi sge, %22, %23 : vector<1x256xi32>
    %c15_i32 = arith.constant 15 : i32
    %25 = vector.broadcast %c15_i32 : i32 to vector<1x256xi32>
    %26 = arith.cmpi slt, %22, %25 : vector<1x256xi32>
    %cst = arith.constant 0.000000e+00 : f32
    %27 = vector.broadcast %cst : f32 to vector<8x128xf32>
    %c0_18 = arith.constant 0 : index
    %c0_19 = arith.constant 0 : index
    %c0_20 = arith.constant 0 : index
    %28 = vector.load %arg1[%c0_18, %c0_19, %c0_20] : memref<1x4x256xf32, #tpu.memory_space<vmem>>, vector<1x4x256xf32>
    %29 = vector.shape_cast %28 : vector<1x4x256xf32> to vector<4x256xf32>
    %cst_21 = arith.constant 0.000000e+00 : f32
    %30 = vector.broadcast %cst_21 : f32 to vector<8x256xf32>
    %31 = vector.extract_strided_slice %0 {offsets = [0, 0, 0], sizes = [1, 8, 1], strides = [1, 1, 1]} : vector<4x8x1xf32> to vector<1x8x1xf32>
    %32 = vector.shape_cast %31 : vector<1x8x1xf32> to vector<8x1xf32>
    %33 = vector.extract_strided_slice %29 {offsets = [0, 0], sizes = [1, 256], strides = [1, 1]} : vector<4x256xf32> to vector<1x256xf32>
    %34 = vector.broadcast %32 : vector<8x1xf32> to vector<8x256xf32>
    %35 = vector.broadcast %33 : vector<1x256xf32> to vector<8x256xf32>
    %36 = arith.mulf %34, %35 : vector<8x256xf32>
    %37 = arith.addf %30, %36 : vector<8x256xf32>
    %38 = vector.extract_strided_slice %0 {offsets = [1, 0, 0], sizes = [1, 8, 1], strides = [1, 1, 1]} : vector<4x8x1xf32> to vector<1x8x1xf32>
    %39 = vector.shape_cast %38 : vector<1x8x1xf32> to vector<8x1xf32>
    %40 = vector.extract_strided_slice %29 {offsets = [1, 0], sizes = [1, 256], strides = [1, 1]} : vector<4x256xf32> to vector<1x256xf32>
    %41 = vector.broadcast %39 : vector<8x1xf32> to vector<8x256xf32>
    %42 = vector.broadcast %40 : vector<1x256xf32> to vector<8x256xf32>
    %43 = arith.mulf %41, %42 : vector<8x256xf32>
    %44 = arith.addf %37, %43 : vector<8x256xf32>
    %45 = vector.extract_strided_slice %0 {offsets = [2, 0, 0], sizes = [1, 8, 1], strides = [1, 1, 1]} : vector<4x8x1xf32> to vector<1x8x1xf32>
    %46 = vector.shape_cast %45 : vector<1x8x1xf32> to vector<8x1xf32>
    %47 = vector.extract_strided_slice %29 {offsets = [2, 0], sizes = [1, 256], strides = [1, 1]} : vector<4x256xf32> to vector<1x256xf32>
    %48 = vector.broadcast %46 : vector<8x1xf32> to vector<8x256xf32>
    %49 = vector.broadcast %47 : vector<1x256xf32> to vector<8x256xf32>
    %50 = arith.mulf %48, %49 : vector<8x256xf32>
    %51 = arith.addf %44, %50 : vector<8x256xf32>
    %52 = vector.extract_strided_slice %0 {offsets = [3, 0, 0], sizes = [1, 8, 1], strides = [1, 1, 1]} : vector<4x8x1xf32> to vector<1x8x1xf32>
    %53 = vector.shape_cast %52 : vector<1x8x1xf32> to vector<8x1xf32>
    %54 = vector.extract_strided_slice %29 {offsets = [3, 0], sizes = [1, 256], strides = [1, 1]} : vector<4x256xf32> to vector<1x256xf32>
    %55 = vector.broadcast %53 : vector<8x1xf32> to vector<8x256xf32>
    %56 = vector.broadcast %54 : vector<1x256xf32> to vector<8x256xf32>
    %57 = arith.mulf %55, %56 : vector<8x256xf32>
    %58 = arith.addf %51, %57 : vector<8x256xf32>
    %59 = vector.broadcast %3 : vector<8x1xf32> to vector<8x256xf32>
    %60 = arith.addf %58, %59 : vector<8x256xf32>
    %cst_22 = arith.constant 0.000000e+00 : f32
    %cst_23 = arith.constant 6.000000e+00 : f32
    %61 = vector.broadcast %cst_22 : f32 to vector<8x256xf32>
    %62 = arith.maximumf %61, %60 : vector<8x256xf32>
    %63 = vector.broadcast %cst_23 : f32 to vector<8x256xf32>
    %64 = arith.minimumf %63, %62 : vector<8x256xf32>
    %65 = tpu.concatenate %27, %64, %27 in 1 : vector<8x128xf32>, vector<8x256xf32>, vector<8x128xf32> -> vector<8x512xf32>
    %66 = vector.extract_strided_slice %1 {offsets = [4, 0, 0], sizes = [1, 8, 1], strides = [1, 1, 1]} : vector<9x8x1xf32> to vector<1x8x1xf32>
    %67 = vector.shape_cast %66 : vector<1x8x1xf32> to vector<8x1xf32>
    %68 = vector.broadcast %67 : vector<8x1xf32> to vector<8x256xf32>
    %69 = arith.mulf %68, %64 : vector<8x256xf32>
    %70 = vector.extract_strided_slice %65 {offsets = [0, 111], sizes = [8, 256], strides = [1, 1]} : vector<8x512xf32> to vector<8x256xf32>
    %cst_24 = arith.constant 0.000000e+00 : f32
    %71 = vector.shape_cast %24 : vector<1x256xi1> to vector<1x256xi1>
    %72 = vector.broadcast %71 : vector<1x256xi1> to vector<8x256xi1>
    %73 = vector.broadcast %cst_24 : f32 to vector<8x256xf32>
    %74 = arith.select %72, %70, %73 : vector<8x256xi1>, vector<8x256xf32>
    %75 = vector.extract_strided_slice %1 {offsets = [0, 0, 0], sizes = [1, 8, 1], strides = [1, 1, 1]} : vector<9x8x1xf32> to vector<1x8x1xf32>
    %76 = vector.shape_cast %75 : vector<1x8x1xf32> to vector<8x1xf32>
    %77 = vector.broadcast %76 : vector<8x1xf32> to vector<8x256xf32>
    %78 = arith.mulf %77, %74 : vector<8x256xf32>
    %79 = arith.addf %69, %78 : vector<8x256xf32>
    %80 = vector.extract_strided_slice %65 {offsets = [0, 112], sizes = [8, 256], strides = [1, 1]} : vector<8x512xf32> to vector<8x256xf32>
    %81 = vector.extract_strided_slice %1 {offsets = [1, 0, 0], sizes = [1, 8, 1], strides = [1, 1, 1]} : vector<9x8x1xf32> to vector<1x8x1xf32>
    %82 = vector.shape_cast %81 : vector<1x8x1xf32> to vector<8x1xf32>
    %83 = vector.broadcast %82 : vector<8x1xf32> to vector<8x256xf32>
    %84 = arith.mulf %83, %80 : vector<8x256xf32>
    %85 = arith.addf %79, %84 : vector<8x256xf32>
    %86 = vector.extract_strided_slice %65 {offsets = [0, 113], sizes = [8, 256], strides = [1, 1]} : vector<8x512xf32> to vector<8x256xf32>
    %cst_25 = arith.constant 0.000000e+00 : f32
    %87 = vector.shape_cast %26 : vector<1x256xi1> to vector<1x256xi1>
    %88 = vector.broadcast %87 : vector<1x256xi1> to vector<8x256xi1>
    %89 = vector.broadcast %cst_25 : f32 to vector<8x256xf32>
    %90 = arith.select %88, %86, %89 : vector<8x256xi1>, vector<8x256xf32>
    %91 = vector.extract_strided_slice %1 {offsets = [2, 0, 0], sizes = [1, 8, 1], strides = [1, 1, 1]} : vector<9x8x1xf32> to vector<1x8x1xf32>
    %92 = vector.shape_cast %91 : vector<1x8x1xf32> to vector<8x1xf32>
    %93 = vector.broadcast %92 : vector<8x1xf32> to vector<8x256xf32>
    %94 = arith.mulf %93, %90 : vector<8x256xf32>
    %95 = arith.addf %85, %94 : vector<8x256xf32>
    %96 = vector.extract_strided_slice %65 {offsets = [0, 127], sizes = [8, 256], strides = [1, 1]} : vector<8x512xf32> to vector<8x256xf32>
    %cst_26 = arith.constant 0.000000e+00 : f32
    %97 = vector.shape_cast %24 : vector<1x256xi1> to vector<1x256xi1>
    %98 = vector.broadcast %97 : vector<1x256xi1> to vector<8x256xi1>
    %99 = vector.broadcast %cst_26 : f32 to vector<8x256xf32>
    %100 = arith.select %98, %96, %99 : vector<8x256xi1>, vector<8x256xf32>
    %101 = vector.extract_strided_slice %1 {offsets = [3, 0, 0], sizes = [1, 8, 1], strides = [1, 1, 1]} : vector<9x8x1xf32> to vector<1x8x1xf32>
    %102 = vector.shape_cast %101 : vector<1x8x1xf32> to vector<8x1xf32>
    %103 = vector.broadcast %102 : vector<8x1xf32> to vector<8x256xf32>
    %104 = arith.mulf %103, %100 : vector<8x256xf32>
    %105 = arith.addf %95, %104 : vector<8x256xf32>
    %106 = vector.extract_strided_slice %65 {offsets = [0, 129], sizes = [8, 256], strides = [1, 1]} : vector<8x512xf32> to vector<8x256xf32>
    %cst_27 = arith.constant 0.000000e+00 : f32
    %107 = vector.shape_cast %26 : vector<1x256xi1> to vector<1x256xi1>
    %108 = vector.broadcast %107 : vector<1x256xi1> to vector<8x256xi1>
    %109 = vector.broadcast %cst_27 : f32 to vector<8x256xf32>
    %110 = arith.select %108, %106, %109 : vector<8x256xi1>, vector<8x256xf32>
    %111 = vector.extract_strided_slice %1 {offsets = [5, 0, 0], sizes = [1, 8, 1], strides = [1, 1, 1]} : vector<9x8x1xf32> to vector<1x8x1xf32>
    %112 = vector.shape_cast %111 : vector<1x8x1xf32> to vector<8x1xf32>
    %113 = vector.broadcast %112 : vector<8x1xf32> to vector<8x256xf32>
    %114 = arith.mulf %113, %110 : vector<8x256xf32>
    %115 = arith.addf %105, %114 : vector<8x256xf32>
    %116 = vector.extract_strided_slice %65 {offsets = [0, 143], sizes = [8, 256], strides = [1, 1]} : vector<8x512xf32> to vector<8x256xf32>
    %cst_28 = arith.constant 0.000000e+00 : f32
    %117 = vector.shape_cast %24 : vector<1x256xi1> to vector<1x256xi1>
    %118 = vector.broadcast %117 : vector<1x256xi1> to vector<8x256xi1>
    %119 = vector.broadcast %cst_28 : f32 to vector<8x256xf32>
    %120 = arith.select %118, %116, %119 : vector<8x256xi1>, vector<8x256xf32>
    %121 = vector.extract_strided_slice %1 {offsets = [6, 0, 0], sizes = [1, 8, 1], strides = [1, 1, 1]} : vector<9x8x1xf32> to vector<1x8x1xf32>
    %122 = vector.shape_cast %121 : vector<1x8x1xf32> to vector<8x1xf32>
    %123 = vector.broadcast %122 : vector<8x1xf32> to vector<8x256xf32>
    %124 = arith.mulf %123, %120 : vector<8x256xf32>
    %125 = arith.addf %115, %124 : vector<8x256xf32>
    %126 = vector.extract_strided_slice %65 {offsets = [0, 144], sizes = [8, 256], strides = [1, 1]} : vector<8x512xf32> to vector<8x256xf32>
    %127 = vector.extract_strided_slice %1 {offsets = [7, 0, 0], sizes = [1, 8, 1], strides = [1, 1, 1]} : vector<9x8x1xf32> to vector<1x8x1xf32>
    %128 = vector.shape_cast %127 : vector<1x8x1xf32> to vector<8x1xf32>
    %129 = vector.broadcast %128 : vector<8x1xf32> to vector<8x256xf32>
    %130 = arith.mulf %129, %126 : vector<8x256xf32>
    %131 = arith.addf %125, %130 : vector<8x256xf32>
    %132 = vector.extract_strided_slice %65 {offsets = [0, 145], sizes = [8, 256], strides = [1, 1]} : vector<8x512xf32> to vector<8x256xf32>
    %cst_29 = arith.constant 0.000000e+00 : f32
    %133 = vector.shape_cast %26 : vector<1x256xi1> to vector<1x256xi1>
    %134 = vector.broadcast %133 : vector<1x256xi1> to vector<8x256xi1>
    %135 = vector.broadcast %cst_29 : f32 to vector<8x256xf32>
    %136 = arith.select %134, %132, %135 : vector<8x256xi1>, vector<8x256xf32>
    %137 = vector.extract_strided_slice %1 {offsets = [8, 0, 0], sizes = [1, 8, 1], strides = [1, 1, 1]} : vector<9x8x1xf32> to vector<1x8x1xf32>
    %138 = vector.shape_cast %137 : vector<1x8x1xf32> to vector<8x1xf32>
    %139 = vector.broadcast %138 : vector<8x1xf32> to vector<8x256xf32>
    %140 = arith.mulf %139, %136 : vector<8x256xf32>
    %141 = arith.addf %131, %140 : vector<8x256xf32>
    %142 = vector.broadcast %4 : vector<8x1xf32> to vector<8x256xf32>
    %143 = arith.addf %141, %142 : vector<8x256xf32>
    %cst_30 = arith.constant 0.000000e+00 : f32
    %cst_31 = arith.constant 6.000000e+00 : f32
    %144 = vector.broadcast %cst_30 : f32 to vector<8x256xf32>
    %145 = arith.maximumf %144, %143 : vector<8x256xf32>
    %146 = vector.broadcast %cst_31 : f32 to vector<8x256xf32>
    %147 = arith.minimumf %146, %145 : vector<8x256xf32>
    %cst_32 = arith.constant 0.000000e+00 : f32
    %148 = vector.broadcast %cst_32 : f32 to vector<4x256xf32>
    %149 = vector.extract_strided_slice %2 {offsets = [0, 0, 0], sizes = [1, 4, 1], strides = [1, 1, 1]} : vector<8x4x1xf32> to vector<1x4x1xf32>
    %150 = vector.shape_cast %149 : vector<1x4x1xf32> to vector<4x1xf32>
    %151 = vector.extract_strided_slice %147 {offsets = [0, 0], sizes = [1, 256], strides = [1, 1]} : vector<8x256xf32> to vector<1x256xf32>
    %152 = vector.broadcast %150 : vector<4x1xf32> to vector<4x256xf32>
    %153 = vector.broadcast %151 : vector<1x256xf32> to vector<4x256xf32>
    %154 = arith.mulf %152, %153 : vector<4x256xf32>
    %155 = arith.addf %148, %154 : vector<4x256xf32>
    %156 = vector.extract_strided_slice %2 {offsets = [1, 0, 0], sizes = [1, 4, 1], strides = [1, 1, 1]} : vector<8x4x1xf32> to vector<1x4x1xf32>
    %157 = vector.shape_cast %156 : vector<1x4x1xf32> to vector<4x1xf32>
    %158 = vector.extract_strided_slice %147 {offsets = [1, 0], sizes = [1, 256], strides = [1, 1]} : vector<8x256xf32> to vector<1x256xf32>
    %159 = vector.broadcast %157 : vector<4x1xf32> to vector<4x256xf32>
    %160 = vector.broadcast %158 : vector<1x256xf32> to vector<4x256xf32>
    %161 = arith.mulf %159, %160 : vector<4x256xf32>
    %162 = arith.addf %155, %161 : vector<4x256xf32>
    %163 = vector.extract_strided_slice %2 {offsets = [2, 0, 0], sizes = [1, 4, 1], strides = [1, 1, 1]} : vector<8x4x1xf32> to vector<1x4x1xf32>
    %164 = vector.shape_cast %163 : vector<1x4x1xf32> to vector<4x1xf32>
    %165 = vector.extract_strided_slice %147 {offsets = [2, 0], sizes = [1, 256], strides = [1, 1]} : vector<8x256xf32> to vector<1x256xf32>
    %166 = vector.broadcast %164 : vector<4x1xf32> to vector<4x256xf32>
    %167 = vector.broadcast %165 : vector<1x256xf32> to vector<4x256xf32>
    %168 = arith.mulf %166, %167 : vector<4x256xf32>
    %169 = arith.addf %162, %168 : vector<4x256xf32>
    %170 = vector.extract_strided_slice %2 {offsets = [3, 0, 0], sizes = [1, 4, 1], strides = [1, 1, 1]} : vector<8x4x1xf32> to vector<1x4x1xf32>
    %171 = vector.shape_cast %170 : vector<1x4x1xf32> to vector<4x1xf32>
    %172 = vector.extract_strided_slice %147 {offsets = [3, 0], sizes = [1, 256], strides = [1, 1]} : vector<8x256xf32> to vector<1x256xf32>
    %173 = vector.broadcast %171 : vector<4x1xf32> to vector<4x256xf32>
    %174 = vector.broadcast %172 : vector<1x256xf32> to vector<4x256xf32>
    %175 = arith.mulf %173, %174 : vector<4x256xf32>
    %176 = arith.addf %169, %175 : vector<4x256xf32>
    %177 = vector.extract_strided_slice %2 {offsets = [4, 0, 0], sizes = [1, 4, 1], strides = [1, 1, 1]} : vector<8x4x1xf32> to vector<1x4x1xf32>
    %178 = vector.shape_cast %177 : vector<1x4x1xf32> to vector<4x1xf32>
    %179 = vector.extract_strided_slice %147 {offsets = [4, 0], sizes = [1, 256], strides = [1, 1]} : vector<8x256xf32> to vector<1x256xf32>
    %180 = vector.broadcast %178 : vector<4x1xf32> to vector<4x256xf32>
    %181 = vector.broadcast %179 : vector<1x256xf32> to vector<4x256xf32>
    %182 = arith.mulf %180, %181 : vector<4x256xf32>
    %183 = arith.addf %176, %182 : vector<4x256xf32>
    %184 = vector.extract_strided_slice %2 {offsets = [5, 0, 0], sizes = [1, 4, 1], strides = [1, 1, 1]} : vector<8x4x1xf32> to vector<1x4x1xf32>
    %185 = vector.shape_cast %184 : vector<1x4x1xf32> to vector<4x1xf32>
    %186 = vector.extract_strided_slice %147 {offsets = [5, 0], sizes = [1, 256], strides = [1, 1]} : vector<8x256xf32> to vector<1x256xf32>
    %187 = vector.broadcast %185 : vector<4x1xf32> to vector<4x256xf32>
    %188 = vector.broadcast %186 : vector<1x256xf32> to vector<4x256xf32>
    %189 = arith.mulf %187, %188 : vector<4x256xf32>
    %190 = arith.addf %183, %189 : vector<4x256xf32>
    %191 = vector.extract_strided_slice %2 {offsets = [6, 0, 0], sizes = [1, 4, 1], strides = [1, 1, 1]} : vector<8x4x1xf32> to vector<1x4x1xf32>
    %192 = vector.shape_cast %191 : vector<1x4x1xf32> to vector<4x1xf32>
    %193 = vector.extract_strided_slice %147 {offsets = [6, 0], sizes = [1, 256], strides = [1, 1]} : vector<8x256xf32> to vector<1x256xf32>
    %194 = vector.broadcast %192 : vector<4x1xf32> to vector<4x256xf32>
    %195 = vector.broadcast %193 : vector<1x256xf32> to vector<4x256xf32>
    %196 = arith.mulf %194, %195 : vector<4x256xf32>
    %197 = arith.addf %190, %196 : vector<4x256xf32>
    %198 = vector.extract_strided_slice %2 {offsets = [7, 0, 0], sizes = [1, 4, 1], strides = [1, 1, 1]} : vector<8x4x1xf32> to vector<1x4x1xf32>
    %199 = vector.shape_cast %198 : vector<1x4x1xf32> to vector<4x1xf32>
    %200 = vector.extract_strided_slice %147 {offsets = [7, 0], sizes = [1, 256], strides = [1, 1]} : vector<8x256xf32> to vector<1x256xf32>
    %201 = vector.broadcast %199 : vector<4x1xf32> to vector<4x256xf32>
    %202 = vector.broadcast %200 : vector<1x256xf32> to vector<4x256xf32>
    %203 = arith.mulf %201, %202 : vector<4x256xf32>
    %204 = arith.addf %197, %203 : vector<4x256xf32>
    %205 = vector.broadcast %5 : vector<4x1xf32> to vector<4x256xf32>
    %206 = arith.addf %204, %205 : vector<4x256xf32>
    %207 = arith.addf %206, %29 : vector<4x256xf32>
    %c0_33 = arith.constant 0 : index
    %c0_34 = arith.constant 0 : index
    %c0_35 = arith.constant 0 : index
    %208 = vector.load %arg8[%c0_33, %c0_34, %c0_35] : memref<1x4x256xf32, #tpu.memory_space<vmem>>, vector<1x4x256xf32>
    %209 = vector.shape_cast %208 : vector<1x4x256xf32> to vector<4x256xf32>
    %210 = vector.shape_cast %207 : vector<4x256xf32> to vector<1x4x256xf32>
    tpu.vector_store %arg8[%c0_33, %c0_34, %c0_35], %210 {strides = array<i32>} : memref<1x4x256xf32, #tpu.memory_space<vmem>>, vector<1x4x256xf32>,
    return
  }
  func.func @transform_0(%arg0: i32) -> (i32, i32, i32) {
    %c0_i32 = arith.constant 0 : i32
    %c0_i32_0 = arith.constant 0 : i32
    %c0_i32_1 = arith.constant 0 : i32
    return %arg0, %c0_i32, %c0_i32_0 : i32, i32, i32
  }
  func.func @transform_1(%arg0: i32) -> (i32, i32, i32) {
    %c0_i32 = arith.constant 0 : i32
    %c0_i32_0 = arith.constant 0 : i32
    %c0_i32_1 = arith.constant 0 : i32
    %c0_i32_2 = arith.constant 0 : i32
    return %c0_i32, %c0_i32_0, %c0_i32_1 : i32, i32, i32
  }
  func.func @transform_2(%arg0: i32) -> (i32, i32) {
    %c0_i32 = arith.constant 0 : i32
    %c0_i32_0 = arith.constant 0 : i32
    %c0_i32_1 = arith.constant 0 : i32
    return %c0_i32, %c0_i32_0 : i32, i32
  }
  func.func @transform_3(%arg0: i32) -> (i32, i32, i32) {
    %c0_i32 = arith.constant 0 : i32
    %c0_i32_0 = arith.constant 0 : i32
    %c0_i32_1 = arith.constant 0 : i32
    %c0_i32_2 = arith.constant 0 : i32
    return %c0_i32, %c0_i32_0, %c0_i32_1 : i32, i32, i32
  }
  func.func @transform_4(%arg0: i32) -> (i32, i32) {
    %c0_i32 = arith.constant 0 : i32
    %c0_i32_0 = arith.constant 0 : i32
    %c0_i32_1 = arith.constant 0 : i32
    return %c0_i32, %c0_i32_0 : i32, i32
  }
  func.func @transform_5(%arg0: i32) -> (i32, i32, i32) {
    %c0_i32 = arith.constant 0 : i32
    %c0_i32_0 = arith.constant 0 : i32
    %c0_i32_1 = arith.constant 0 : i32
    %c0_i32_2 = arith.constant 0 : i32
    return %c0_i32, %c0_i32_0, %c0_i32_1 : i32, i32, i32
  }
  func.func @transform_6(%arg0: i32) -> (i32, i32) {
    %c0_i32 = arith.constant 0 : i32
    %c0_i32_0 = arith.constant 0 : i32
    %c0_i32_1 = arith.constant 0 : i32
    return %c0_i32, %c0_i32_0 : i32, i32
  }
  func.func @transform_7(%arg0: i32) -> (i32, i32, i32) {
    %c0_i32 = arith.constant 0 : i32
    %c0_i32_0 = arith.constant 0 : i32
    %c0_i32_1 = arith.constant 0 : i32
    return %arg0, %c0_i32, %c0_i32_0 : i32, i32, i32
  }
}

</mosaic_0001>

<bundles_post_ra>
// kernel: tpu_custom_call.1
= control target key start
LH: loop header
LB: loop body
LE: loop exit
PB: predicated region body
PF: predicated region fallthrough
CT: control target
= control target key end

     0   :  { %12 = vsyncpa [#allocation3], 0  ;;  %s1407_s0 = inlined_call_operand.vmem [shape: f32[2,4,256], index: 0, kind: input, shape index: {}]   ;;  %s1408_s1 = inlined_call_operand.vmem [shape: f32[4,8,1], index: 1, kind: input, shape index: {}]   ;;  %s1409_s2 = inlined_call_operand.vmem [shape: f32[8,1], index: 2, kind: input, shape index: {}]   ;;  %s1410_s3 = inlined_call_operand.vmem [shape: f32[9,8,1], index: 3, kind: input, shape index: {}]   ;;  %s1411_s4 = inlined_call_operand.vmem [shape: f32[8,1], index: 4, kind: input, shape index: {}]   ;;  %s1412_s5 = inlined_call_operand.vmem [shape: f32[8,4,1], index: 5, kind: input, shape index: {}]   ;;  %s1413_s6 = inlined_call_operand.vmem [shape: f32[4,1], index: 6, kind: input, shape index: {}]   ;;  %s1414_s7 = inlined_call_operand.hbm [shape: f32[2,4,256], index: 7, kind: output, shape index: {}]  }
   0x1   :  { %14 = vsyncpa [#allocation3 + $0x1], 0  ;;  %s1069_s24 = smov 0   ;;  %s1071_s25 = smov 0  }
   0x2   :  { %s1073_s26 = smov 0   ;;  %s1075_s27 = smov 0  }
   0x3 LB: > { %s1090_s28 = sadd.s32 4294967295, %s1016_s27   ;;  %s888_s29 = sadd.s32 4294967294, %s1016_s27   ;;  %s1016_s27 = sphi %s1075_s27, %s1428_s27   ;;  %s1012_s26 = sphi %s1073_s26, %s1427_s26   ;;  %s1008_s25 = sphi %s1071_s25, %s1426_s25   ;;  %s1004_s24 = sphi %s1069_s24, %s1425_s24  }
   0x4   : > { %s1094_s30 = sadd.s32 1, %s1016_s27   ;;  %s179_s8 = sadd.s32 1, %s1012_s26 }
   0x5   : > { %s176_s9 = ssub.s32 %s1016_s27, %s1094_s30  ;;  %p189_p0 = scmp.ne.s32.totalorder %s1012_s26, %s1008_s25 }
   0x6   : > { %p177_p1 = scmp.eq.s32.totalorder %s176_s9, 0  ;;  %p190_p2 = scmp.eq.s32.totalorder %s1090_s28, 1 }
   0x7   : > { %p195_p3 = scmp.ne.s32.totalorder %s1008_s25, %s1004_s24  ;;  %p196_p4 = scmp.eq.s32.totalorder %s888_s29, 1 }
   0x8   : > { %s1105_s10 = scalar_select %p177_p1, %s1012_s26, %s179_s8  }
   0x9   : > { %p1107_p5 = por %p190_p2, %p189_p0  ;;  %p1111_p6 = por %p196_p4, %p195_p3 }
   0xa   : > { %p891_p7 = scmp.ge.s32.totalorder %s1016_s27, 1  ;;  %p240_p8 = scmp.lt.s32.totalorder %s1016_s27, 3 }
   0xc   : > { %p241_p9 = pnand %p891_p7, %p240_p8 }
   0xd   : > { %v279_v0 = vld [vmem:[%s1408_s1 + $0x10] sm:$0xff] (!%p241_p9)  ;;  %v277_v1 = vld [vmem:[%s1408_s1] sm:$0xff] (!%p241_p9)  ;;  %v1018_v2 = vmov (!%p241_p9), 0   ;;  %v280_v3 = vld [vmem:[%s1408_s1 + $0x18] sm:$0xff] (!%p241_p9)  ;;  %v1019_v12 = vmov (!%p241_p9), 0.0   ;;  %s1020_s21 = smov (!%p241_p9), 17   ;;  %v301_v17 = vlaneseq (!%p241_p9) }
   0xe   : > { %244 = sbr.rel (%p241_p9) target bundleno = 363 (0x16b), region = 48  ;;  %952 = vset.pattern.permute.xlu1 (!%p241_p9), %v1018_v2  ;;  %951 = vset.pattern.permute.xlu0 (!%p241_p9), %v1018_v2  ;;  %v278_v4 = vld [vmem:[%s1408_s1 + $0x8] sm:$0xff] (!%p241_p9)  ;;  %v298_v6 = vld [vmem:[%s1409_s2] sm:$0xff] (!%p241_p9)  ;;  %v288_v8 = vld [vmem:[%s1410_s3 + $0x38] sm:$0xff] (!%p241_p9)  ;;  %s1021_s29 = smov (!%p241_p9), 15   ;;  %vm473_vm0 = vcmask (!%p241_p9), 138240  }
   0xf   : > { %390 = vperm.xlu1 (!%p241_p9), %952, %v279_v0   ;;  %335 = vperm.xlu0 (!%p241_p9), %951, %v277_v1   ;;  %v282_v5 = vld [vmem:[%s1410_s3 + $0x8] sm:$0xff] (!%p241_p9)  ;;  %v285_v7 = vld [vmem:[%s1410_s3 + $0x20] sm:$0xff] (!%p241_p9)  ;;  %v283_v9 = vld [vmem:[%s1410_s3 + $0x10] sm:$0xff] (!%p241_p9)  ;;  %s1022_s13 = smov (!%p241_p9), 1   ;;  %s1023_s16 = smov (!%p241_p9), 127   ;;  %v340_v18 = vshrl.u32 (!%p241_p9), %v301_v17, 7 }
  0x10   : > { %v281_v10 = vld [vmem:[%s1410_s3] sm:$0xff] (!%p241_p9)  ;;  %v284_v11 = vld [vmem:[%s1410_s3 + $0x18] sm:$0xff] (!%p241_p9)  ;;  %v286_v13 = vld [vmem:[%s1410_s3 + $0x28] sm:$0xff] (!%p241_p9)  ;;  %s1024_s19 = smov (!%p241_p9), 113   ;;  %p272_p10 = scmp.lt.s32.totalorder (!%p241_p9), %s1090_s28, 1  ;;  %vm523_vm3 = vcmask (!%p241_p9), 121856  }
  0x11   : > { %v287_v14 = vld [vmem:[%s1410_s3 + $0x30] sm:$0xff] (!%p241_p9)  ;;  %v289_v15 = vld [vmem:[%s1410_s3 + $0x40] sm:$0xff] (!%p241_p9)  ;;  %v1178_v19 = vsub.s32 (!%p241_p9), 0, %v340_v18  ;;  %v1180_v20 = vsub.s32 (!%p241_p9), 4, %v340_v18  ;;  %v1182_v21 = vsub.s32 (!%p241_p9), 1, %v340_v18  ;;  %v1184_v22 = vsub.s32 (!%p241_p9), 5, %v340_v18 }
  0x12   : > { %v299_v16 = vld [vmem:[%s1411_s4] sm:$0xff] (!%p241_p9)  ;;  %v1188_v24 = vsub.s32 (!%p241_p9), 2, %v340_v18  ;;  %v1190_v25 = vsub.s32 (!%p241_p9), 6, %v340_v18  ;;  %v1192_v26 = vsub.s32 (!%p241_p9), 3, %v340_v18  ;;  %v1194_v27 = vsub.s32 (!%p241_p9), 7, %v340_v18  ;;  %s1025_s14 = smov (!%p241_p9), 16  }
  0x13   : > { %417 = vperm.xlu1 (!%p241_p9), %952, %v280_v3   ;;  %363 = vperm.xlu0 (!%p241_p9), %951, %v278_v4   ;;  %v295_v18 = vld [vmem:[%s1412_s5 + $0x14] sm:$0xf] (!%p241_p9)  ;;  %vm545_vm4 = vcmask (!%p241_p9), 7168   ;;  %vm567_vm7 = vcmask (!%p241_p9), 1039360   ;;  %vm506_vm8 = vcmask (!%p241_p9), 130048   ;;  %vm589_vm9 = vcmask (!%p241_p9), 924672  }
  0x14   : > { %vm635_vm10 = vcmask (!%p241_p9), 908288   ;;  %vm622_vm11 = vcmask (!%p241_p9), 916480   ;;  %s269_s18 = sand.u32 (!%p241_p9), 1, %s1008_s25  }
  0x15   : > { %s273_s20 = scalar_select %p272_p10, %s1090_s28, 1 }
  0x17   : > { %491 = vperm.xlu1 %952, %v282_v5   ;;  %444 = vperm.xlu0 %951, %v298_v6   ;;  %s900_s22 = sshll.u32 %s273_s20, 3  ;;  %s901_s20 = sshll.u32 %s1090_s28, 7 }
  0x18   : > { %s276_s9 = scalar_lea.vmem %s1407_s0, %s900_s22  ;;  %s1028_s28 = smov [#allocation2]  }
  0x19   : > { %v1186_v23 = vld [vmem:[%s276_s9] sm:$0xff] }
  0x1a   : > { %v342_v28 = vrot.slane %v1186_v23, %v1178_v19  ;;  %v346_v29 = vrot.slane %v1186_v23, %v1180_v20  ;;  %v369_v30 = vrot.slane %v1186_v23, %v1182_v21  ;;  %v373_v31 = vrot.slane %v1186_v23, %v1184_v22 }
  0x1b   : > { %455 = vperm.xlu1 %952, %v285_v7   ;;  %607 = vperm.xlu0 %951, %v288_v8   ;;  %v396_v32 = vrot.slane %v1186_v23, %v1188_v24  ;;  %v400_v33 = vrot.slane %v1186_v23, %v1190_v25  ;;  %v423_v36 = vrot.slane %v1186_v23, %v1192_v26 }
  0x1c   : > { %v427_v37 = vrot.slane %v1186_v23, %v1194_v27  ;;  %v352_v38 = vrot.slane %v342_v28, %v1178_v19  ;;  %v356_v39 = vrot.slane %v346_v29, %v1178_v19  ;;  %v379_v40 = vrot.slane %v369_v30, %v1182_v21  ;;  %v294_v28 = vld [vmem:[%s1412_s5 + $0x10] sm:$0xf]  ;;  %v297_v29 = vld [vmem:[%s1412_s5 + $0x1c] sm:$0xf]  ;;  %v296_v30 = vld [vmem:[%s1412_s5 + $0x18] sm:$0xf] }
  0x1d   : > { %v383_v41 = vrot.slane %v373_v31, %v1182_v21  ;;  %v406_v42 = vrot.slane %v396_v32, %v1188_v24  ;;  %v410_v43 = vrot.slane %v400_v33, %v1188_v24  ;;  %v433_v45 = vrot.slane %v423_v36, %v1192_v26  ;;  %v300_v31 = vld [vmem:[%s1413_s6] sm:$0xf] }
  0x1e   : > { %v437_v46 = vrot.slane %v427_v37, %v1192_v26 }
  0x1f   : > { %532 = vperm.xlu1 %952, %v283_v9   ;;  %482 = vperm.xlu0 %951, %v281_v10  }
  0x23   : > { %554 = vperm.xlu1 %952, %v284_v11   ;;  %467 = vrot.lane.b32.xlu0 %v1019_v12, %s1020_s21 }
  0x27   : > { %517 = vrot.lane.b32.xlu1 %v1019_v12, %s1021_s29  ;;  %576 = vperm.xlu0 %951, %v286_v13  }
  0x2b   : > { %598 = vperm.xlu1 %952, %v287_v14   ;;  %539 = vrot.lane.b32.xlu0 %v1019_v12, %s1022_s13  ;;  %v291_v14 = vld [vmem:[%s1412_s5 + $0x4] sm:$0xf] }
  0x2f   : > { %644 = vperm.xlu0 %951, %v289_v15   ;;  %565 = vrot.lane.b32.xlu1 %v1019_v12, %s1023_s16  ;;  %v290_v15 = vld [vmem:[%s1412_s5] sm:$0xf] }
  0x33   : > { %653 = vperm.xlu0 %951, %v299_v16   ;;  %587 = vrot.lane.b32.xlu1 %v1019_v12, %s1024_s19  ;;  %v293_v16 = vld [vmem:[%s1412_s5 + $0xc] sm:$0xf] }
  0x8e   : > { %v391_v34 = vpop.permute.xlu1 %390  ;;  %v336_v35 = vpop.permute.xlu0 %335 }
  0x8f   : > { %v357_v48 = vmul.f32 %v352_v38, %v336_v35  ;;  %v358_v49 = vmul.f32 %v356_v39, %v336_v35  ;;  %v411_v52 = vmul.f32 %v406_v42, %v391_v34  ;;  %v412_v53 = vmul.f32 %v410_v43, %v391_v34 }
  0x92   : > { %v418_v44 = vpop.permute.xlu1 %417  ;;  %v364_v47 = vpop.permute.xlu0 %363 }
  0x93   : > { %v384_v50 = vmul.f32 %v379_v40, %v364_v47  ;;  %v385_v51 = vmul.f32 %v383_v41, %v364_v47  ;;  %v438_v56 = vmul.f32 %v433_v45, %v418_v44  ;;  %v439_v58 = vmul.f32 %v437_v46, %v418_v44 }
  0x94   : > { %v302_v46 = vand.u32 127, %v301_v17 }
  0x95   : > { %v386_v54 = vadd.f32 %v384_v50, %v357_v48  ;;  %v387_v55 = vadd.f32 %v385_v51, %v358_v49 }
  0x96   : > { %v492_v57 = vpop.permute.xlu1 %491  ;;  %v445_v0 = vpop.permute.xlu0 %444  ;;  %v303_v49 = vadd.s32 128, %v302_v46 }
  0x97   : > { %v494_v59 = vmul.f32 0.0, %v492_v57  ;;  %v413_v60 = vadd.f32 %v411_v52, %v386_v54  ;;  %v414_v61 = vadd.f32 %v412_v53, %v387_v55  ;;  %v308_v52 = vand.u32 15, %v302_v46 }
  0x98   : > { %v315_v53 = vand.u32 15, %v303_v49 }
  0x99   : > { %v440_v62 = vadd.f32 %v438_v56, %v413_v60  ;;  %v441_v63 = vadd.f32 %v439_v58, %v414_v61  ;;  %500 = vrot.lane.b32.xlu0 %v494_v59, %s1025_s14  ;;  %vm1289_vm1 = vcmp.ge.s32.totalorder %v308_v52, 1  ;;  %vm1301_vm5 = vcmp.lt.s32.totalorder %v308_v52, 15 }
  0x9a   : > { %v608_v9 = vpop.permute.xlu0 %607  ;;  %v456_v32 = vpop.permute.xlu1 %455  ;;  %vm1293_vm2 = vcmp.ge.s32.totalorder %v315_v53, 1  ;;  %vm1305_vm6 = vcmp.lt.s32.totalorder %v315_v53, 15 }
  0x9b   : > { %v447_v1 = vadd.f32 %v445_v0, %v440_v62  ;;  %v448_v2 = vadd.f32 %v445_v0, %v441_v63  ;;  %v612_v11 = vmul.f32 0.0, %v608_v9 }
  0x9d   : > { %v449_v3 = vmax.f32 %v447_v1, 0.0  ;;  %v450_v4 = vmax.f32 %v448_v2, 0.0 }
  0x9e   : > { %v483_v33 = vpop.permute.xlu0 %482  ;;  %v533_v34 = vpop.permute.xlu1 %532 }
  0x9f   : > { %v1220_v5 = vmin.f32 %v449_v3, 6.0  ;;  %v1222_v6 = vmin.f32 %v450_v4, 6.0 }
  0xa1   : > { %471 = vrot.lane.b32.xlu0 %v1222_v6, %s1020_s21  ;;  %469 = vrot.lane.b32.xlu1 %v1220_v5, %s1020_s21  ;;  %v496_v7 = vmul.f32 %v492_v57, %v1222_v6  ;;  %v495_v8 = vmul.f32 %v492_v57, %v1220_v5  ;;  %s1026_s21 = smov 111   ;;  %v610_v10 = vmul.f32 %v608_v9, %v1220_v5 }
  0xa2   : > { %v611_v13 = vmul.f32 %v608_v9, %v1222_v6  ;;  %v468_v35 = vpop.permute.xlu0 %467  ;;  %v1278_v36 = vpop.permute.xlu1 %554  ;;  %v458_v9 = vmul.f32 %v456_v32, %v1220_v5 }
  0xa5   : > { %519 = vrot.lane.b32.xlu0 %v1220_v5, %s1021_s29  ;;  %521 = vrot.lane.b32.xlu1 %v1222_v6, %s1021_s29  ;;  %s1027_s29 = smov 112  }
  0xa6   : > { %v1280_v37 = vpop.permute.xlu0 %576  ;;  %v518_v38 = vpop.permute.xlu1 %517 }
  0xa9   : > { %543 = vrot.lane.b32.xlu0 %v1222_v6, %s1022_s13  ;;  %541 = vrot.lane.b32.xlu1 %v1220_v5, %s1022_s13  ;;  %s958_s13 = sshll.u32 %s1028_s28, 4  ;;  %s959_s13 = int_to_ptr.vmem [resolvable:$false] %s958_s13 }
  0xaa   : > { %v540_v39 = vpop.permute.xlu0 %539  ;;  %v1282_v40 = vpop.permute.xlu1 %598  ;;  %s960_s15 = scalar_lea.vmem %s959_s13, 256 }
  0xad   : > { %563 = vrot.lane.b32.xlu0 %v1222_v6, %s1023_s16  ;;  %561 = vrot.lane.b32.xlu1 %v1220_v5, %s1023_s16 }
  0xae   : > { %v1284_v41 = vpop.permute.xlu0 %644  ;;  %v566_v42 = vpop.permute.xlu1 %565 }
  0xb1   : > { %585 = vrot.lane.b32.xlu0 %v1222_v6, %s1024_s19  ;;  %583 = vrot.lane.b32.xlu1 %v1220_v5, %s1024_s19  ;;  %s892_s19 = sshll.u32 %s269_s18, 3 }
  0xb2   : > { %v1286_v43 = vpop.permute.xlu0 %653  ;;  %v588_v44 = vpop.permute.xlu1 %587  ;;  %s271_s22 = scalar_lea.vmem [#allocation2], %s892_s19 }
  0xb3   : > { %s829_s23 = sshll.u32 %s271_s22, 4  ;;  %s1367_s23 = int_to_ptr.vmem [resolvable:$true] %s829_s23 }
  0xb4   : > { %p961_p0 = scmp.lt.s32.totalorder %s1367_s23, %s959_s13 }
  0xb5   : > { %504 = vrot.lane.b32.xlu0 %v496_v7, %s1025_s14  ;;  %502 = vrot.lane.b32.xlu1 %v495_v8, %s1025_s14  ;;  %s1365_s14 = scalar_lea.hbm %s1414_s7, %s901_s20 }
  0xb9   : > { %631 = vrot.lane.b32.xlu0 %v1222_v6, %s1026_s21  ;;  %629 = vrot.lane.b32.xlu1 %v1220_v5, %s1026_s21 }
  0xbd   : > { %616 = vrot.lane.b32.xlu0 %v610_v10, %s1027_s29  ;;  %633 = vrot.lane.b32.xlu1 %v1019_v12, %s1026_s21  ;;  %v292_v12 = vld [vmem:[%s1412_s5 + $0x8] sm:$0xf]  ;;  %v459_v10 = vmul.f32 %v456_v32, %v1222_v6  ;;  %s815_s21 = scalar_lea.sflag [#allocation3], %s269_s18 }
  0xc1   : > { %620 = vrot.lane.b32.xlu0 %v612_v11, %s1027_s29  ;;  %618 = vrot.lane.b32.xlu1 %v611_v13, %s1027_s29  ;;  %s954_s29 = scalar_lea.vmem %s1367_s23, 128 }
  0xc2   : > { %p955_p11 = scmp.ne.s32.totalorder %s1367_s23, %s954_s29  ;;  %p962_p1 = scmp.lt.s32.totalorder %s960_s15, %s954_s29 }
  0xc4   : > { %p956_p12 = pnand %p955_p11, %p1107_p5  ;;  %p963_p2 = por %p962_p1, %p961_p0 }
  0xc5   : > { %681 = vperm.xlu0 %951, %v291_v14   ;;  %664 = vperm.xlu1 %952, %v290_v15  }
  0xc6   : > { %p957_p13 = pneg %p956_p12 }
  0xc8   : > { %p964_p3 = pnand %p963_p2, %p957_p13 }
  0xc9   : > { %715 = vperm.xlu0 %951, %v293_v16   ;;  %698 = vperm.xlu1 %952, %v292_v12  }
  0xcd   : > { %749 = vperm.xlu0 %951, %v295_v18   ;;  %732 = vperm.xlu1 %952, %v294_v28  }
  0xd1   : > { %783 = vperm.xlu0 %951, %v297_v29   ;;  %766 = vperm.xlu1 %952, %v296_v30  }
  0xd5   : > { %800 = vperm.xlu1 %952, %v300_v31  }
 0x10b   : > { %v501_v45 = vpop.permute.xlu0 %500 }
 0x113   : > { %v472_v47 = vpop.permute.xlu0 %471  ;;  %v470_v48 = vpop.permute.xlu1 %469 }
 0x114   : > { %v474_v58 = vsel %vm473_vm0, %v468_v35, %v470_v48  ;;  %v475_v17 = vsel %vm473_vm0, %v470_v48, %v472_v47 }
 0x115   : > { %v478_v60 = vsel %vm1289_vm1, %v474_v58, 0.0  ;;  %v479_v61 = vsel %vm1293_vm2, %v475_v17, 0.0 }
 0x116   : > { %v485_v63 = vmul.f32 %v483_v33, %v478_v60  ;;  %v486_v0 = vmul.f32 %v483_v33, %v479_v61 }
 0x117   : > { %v520_v50 = vpop.permute.xlu0 %519  ;;  %v522_v51 = vpop.permute.xlu1 %521 }
 0x118   : > { %v524_v3 = vsel %vm523_vm3, %v518_v38, %v520_v50  ;;  %v525_v7 = vsel %vm523_vm3, %v520_v50, %v522_v51  ;;  %v488_v12 = vadd.f32 %v486_v0, %v459_v10  ;;  %v487_v18 = vadd.f32 %v485_v63, %v458_v9 }
 0x119   : > { %v528_v14 = vsel %vm1301_vm5, %v524_v3, 0.0  ;;  %v529_v15 = vsel %vm1305_vm6, %v525_v7, 0.0 }
 0x11a   : > { %v535_v33 = vmul.f32 %v533_v34, %v528_v14  ;;  %v536_v35 = vmul.f32 %v533_v34, %v529_v15 }
 0x11b   : > { %v544_v54 = vpop.permute.xlu0 %543  ;;  %v542_v55 = vpop.permute.xlu1 %541 }
 0x11c   : > { %v546_v11 = vsel %vm545_vm4, %v540_v39, %v542_v55  ;;  %v547_v13 = vsel %vm545_vm4, %v542_v55, %v544_v54 }
 0x11d   : > { %v550_v28 = vsel %vm1289_vm1, %v546_v11, 0.0  ;;  %v551_v5 = vsel %vm1293_vm2, %v547_v13, 0.0 }
 0x11e   : > { %v557_v46 = vmul.f32 %v1278_v36, %v550_v28  ;;  %v558_v47 = vmul.f32 %v1278_v36, %v551_v5 }
 0x11f   : > { %v564_v59 = vpop.permute.xlu0 %563  ;;  %v562_v62 = vpop.permute.xlu1 %561 }
 0x120   : > { %v569_v29 = vsel %vm567_vm7, %v564_v59, %v566_v42  ;;  %v568_v6 = vsel %vm567_vm7, %v562_v62, %v564_v59 }
 0x121   : > { %v573_v48 = vsel %vm1305_vm6, %v569_v29, 0.0  ;;  %v572_v49 = vsel %vm1301_vm5, %v568_v6, 0.0 }
 0x122   : > { %v580_v34 = vmul.f32 %v1280_v37, %v573_v48  ;;  %v579_v54 = vmul.f32 %v1280_v37, %v572_v49 }
 0x123   : > { %v586_v2 = vpop.permute.xlu0 %585  ;;  %v584_v8 = vpop.permute.xlu1 %583 }
 0x124   : > { %v591_v50 = vsel %vm589_vm9, %v586_v2, %v588_v44  ;;  %v590_v51 = vsel %vm589_vm9, %v584_v8, %v586_v2 }
 0x125   : > { %v595_v36 = vsel %vm1293_vm2, %v591_v50, 0.0  ;;  %v594_v17 = vsel %vm1289_vm1, %v590_v51, 0.0 }
 0x126   : > { %v602_v0 = vmul.f32 %v1282_v40, %v595_v36  ;;  %v601_v2 = vmul.f32 %v1282_v40, %v594_v17 }
 0x127   : > { %v505_v16 = vpop.permute.xlu0 %504  ;;  %v503_v30 = vpop.permute.xlu1 %502 }
 0x128   : > { %v507_v31 = vsel %vm506_vm8, %v501_v45, %v503_v30  ;;  %v508_v32 = vsel %vm506_vm8, %v503_v30, %v505_v16 }
 0x129   : > { %v511_v38 = vadd.f32 %v507_v31, %v487_v18  ;;  %v512_v39 = vadd.f32 %v508_v32, %v488_v12 }
 0x12b   : > { %v632_v42 = vpop.permute.xlu0 %631  ;;  %v537_v52 = vadd.f32 %v535_v33, %v511_v38  ;;  %v538_v45 = vadd.f32 %v536_v35, %v512_v39  ;;  %v630_v53 = vpop.permute.xlu1 %629 }
 0x12c   : > { %v636_v60 = vsel %vm635_vm10, %v630_v53, %v632_v42 }
 0x12d   : > { %v559_v55 = vadd.f32 %v557_v46, %v537_v52  ;;  %v560_v58 = vadd.f32 %v558_v47, %v538_v45  ;;  %v640_v37 = vsel %vm1301_vm5, %v636_v60, 0.0 }
 0x12e   : > { %v647_v11 = vmul.f32 %v1284_v41, %v640_v37 }
 0x12f   : > { %v617_v59 = vpop.permute.xlu0 %616  ;;  %v634_v44 = vpop.permute.xlu1 %633  ;;  %v582_v61 = vadd.f32 %v580_v34, %v560_v58  ;;  %v581_v62 = vadd.f32 %v579_v54, %v559_v55 }
 0x130   : > { %v637_v63 = vsel %vm635_vm10, %v632_v42, %v634_v44 }
 0x131   : > { %v641_v57 = vsel %vm1305_vm6, %v637_v63, 0.0  ;;  %v604_v56 = vadd.f32 %v602_v0, %v582_v61  ;;  %v603_v8 = vadd.f32 %v601_v2, %v581_v62 }
 0x132   : > { %v648_v13 = vmul.f32 %v1284_v41, %v641_v57 }
 0x133   : > { %v621_v3 = vpop.permute.xlu0 %620  ;;  %v619_v7 = vpop.permute.xlu1 %618 }
 0x134   : > { %v623_v9 = vsel %vm622_vm11, %v617_v59, %v619_v7  ;;  %v624_v10 = vsel %vm622_vm11, %v619_v7, %v621_v3 }
 0x135   : > { %v627_v14 = vadd.f32 %v623_v9, %v603_v8  ;;  %v628_v15 = vadd.f32 %v624_v10, %v604_v56 }
 0x137   : > { %v649_v40 = vadd.f32 %v647_v11, %v627_v14  ;;  %v650_v16 = vadd.f32 %v648_v13, %v628_v15  ;;  %v805_v15 = vcombine.high %v1186_v23, %v1186_v23 }
 0x139   : > { %v656_v1 = vadd.f32 %v1286_v43, %v649_v40  ;;  %v657_v12 = vadd.f32 %v1286_v43, %v650_v16 }
 0x13b   : > { %v658_v4 = vmax.f32 %v656_v1, 0.0  ;;  %v659_v18 = vmax.f32 %v657_v12, 0.0 }
 0x13d   : > { %v660_v28 = vmin.f32 %v658_v4, 6.0  ;;  %v661_v5 = vmin.f32 %v659_v18, 6.0 }
 0x13f   : > { %v687_v6 = vrot.slane %v660_v28, %v1182_v21  ;;  %v691_v30 = vrot.slane %v661_v5, %v1182_v21  ;;  %v674_v31 = vrot.slane %v661_v5, %v1178_v19  ;;  %v670_v41 = vrot.slane %v660_v28, %v1178_v19 }
 0x140   : > { %v708_v43 = vrot.slane %v661_v5, %v1188_v24  ;;  %v704_v47 = vrot.slane %v660_v28, %v1188_v24  ;;  %v721_v48 = vrot.slane %v660_v28, %v1192_v26  ;;  %v725_v49 = vrot.slane %v661_v5, %v1192_v26 }
 0x141   : > { %v742_v19 = vrot.slane %v661_v5, %v1180_v20  ;;  %v738_v45 = vrot.slane %v660_v28, %v1180_v20  ;;  %v755_v24 = vrot.slane %v660_v28, %v1184_v22  ;;  %v759_v36 = vrot.slane %v661_v5, %v1184_v22 }
 0x142   : > { %v776_v61 = vrot.slane %v661_v5, %v1190_v25  ;;  %v772_v62 = vrot.slane %v660_v28, %v1190_v25  ;;  %v789_v57 = vrot.slane %v660_v28, %v1194_v27  ;;  %v793_v3 = vrot.slane %v661_v5, %v1194_v27 }
 0x144   : > { %v682_v29 = vpop.permute.xlu0 %681  ;;  %v665_v32 = vpop.permute.xlu1 %664 }
 0x145   : > { %v692_v33 = vmul.f32 %v687_v6, %v682_v29  ;;  %v693_v35 = vmul.f32 %v691_v30, %v682_v29  ;;  %v675_v38 = vmul.f32 %v670_v41, %v665_v32  ;;  %v676_v39 = vmul.f32 %v674_v31, %v665_v32 }
 0x147   : > { %v694_v21 = vadd.f32 %v692_v33, %v675_v38  ;;  %v695_v50 = vadd.f32 %v693_v35, %v676_v39 }
 0x148   : > { %v716_v46 = vpop.permute.xlu0 %715  ;;  %v699_v42 = vpop.permute.xlu1 %698 }
 0x149   : > { %v709_v51 = vmul.f32 %v704_v47, %v699_v42  ;;  %v710_v52 = vmul.f32 %v708_v43, %v699_v42  ;;  %v726_v53 = vmul.f32 %v721_v48, %v716_v46  ;;  %v727_v34 = vmul.f32 %v725_v49, %v716_v46 }
 0x14b   : > { %v711_v54 = vadd.f32 %v709_v51, %v694_v21  ;;  %v712_v55 = vadd.f32 %v710_v52, %v695_v50 }
 0x14c   : > { %v750_v58 = vpop.permute.xlu0 %749  ;;  %v733_v26 = vpop.permute.xlu1 %732 }
 0x14d   : > { %v729_v17 = vadd.f32 %v727_v34, %v712_v55  ;;  %v728_v59 = vadd.f32 %v726_v53, %v711_v54  ;;  %v743_v60 = vmul.f32 %v738_v45, %v733_v26  ;;  %v744_v44 = vmul.f32 %v742_v19, %v733_v26 }
 0x14e   : > { %v760_v20 = vmul.f32 %v755_v24, %v750_v58  ;;  %v761_v63 = vmul.f32 %v759_v36, %v750_v58 }
 0x14f   : > { %v745_v0 = vadd.f32 %v743_v60, %v728_v59  ;;  %v746_v2 = vadd.f32 %v744_v44, %v729_v17 }
 0x150   : > { %v784_v37 = vpop.permute.xlu0 %783  ;;  %v767_v22 = vpop.permute.xlu1 %766 }
 0x151   : > { %v763_v56 = vadd.f32 %v761_v63, %v746_v2  ;;  %v762_v7 = vadd.f32 %v760_v20, %v745_v0  ;;  %v777_v8 = vmul.f32 %v772_v62, %v767_v22  ;;  %v778_v9 = vmul.f32 %v776_v61, %v767_v22 }
 0x152   : > { %v794_v10 = vmul.f32 %v789_v57, %v784_v37  ;;  %v795_v11 = vmul.f32 %v793_v3, %v784_v37 }
 0x153   : > { %v779_v25 = vadd.f32 %v777_v8, %v762_v7  ;;  %v780_v13 = vadd.f32 %v778_v9, %v763_v56 }
 0x154   : > { %v801_v16 = vpop.permute.xlu1 %800 }
 0x155   : > { %v797_v14 = vadd.f32 %v795_v11, %v780_v13  ;;  %v796_v40 = vadd.f32 %v794_v10, %v779_v25 }
 0x157   : > { %v803_v1 = vadd.f32 %v801_v16, %v796_v40  ;;  %v804_v27 = vadd.f32 %v801_v16, %v797_v14 }
 0x159   : > { %v807_v12 = vadd.f32 %v803_v1, %v1186_v23  ;;  %v808_v4 = vadd.f32 %v805_v15, %v804_v27 }
 0x15b   : > { %v811_v18 = vcombine.low %v807_v12, %v808_v4 }
 0x15d   : > { %813 = vst [vmem:[%s271_s22] sm:$0xff] %v811_v18 }
 0x15e   : > { %967 = shalt.err (!%p964_p3)
}
 0x15f   : > { %s968_s16 = scalar_lea.hbm %s1365_s14, 128  ;;  %s972_s19 = scalar_lea.hbm %s1414_s7, 256 }
 0x160   : > { %p969_p4 = scmp.ne.s32.totalorder %s1365_s14, %s968_s16  ;;  %p973_p9 = scmp.lt.u32.totalorder %s1365_s14, %s1414_s7 }
 0x161   : > { %p974_p10 = scmp.lt.u32.totalorder %s972_s19, %s968_s16  ;;  %p976_p12 = scmp.lt.u32.totalorder %s968_s16, %s1365_s14 }
 0x162   : > { %p970_p7 = pnand %p969_p4, %p1107_p5 }
 0x163   : > { %p975_p11 = por %p974_p10, %p973_p9 }
 0x164   : > { %p971_p8 = pneg %p970_p7 }
 0x165   : > { %p977_p13 = por %p976_p12, %p975_p11 }
 0x167   : > { %p978_p0 = pnand %p977_p13, %p971_p8 }
 0x169   : > { %981 = shalt.err (!%p978_p0)
}
 0x16a   : > { %902 = dma.vmem_to_hbm [thread:$0]  (%p1107_p5), %s1367_s23, 128, %s1365_s14, %s815_s21  }
 0x16b PF: > { %p908_p1 = scmp.ge.s32.totalorder %s1016_s27, 2  ;;  %s841_s8 = sand.u32 1, %s1004_s24  }
 0x16c   : > { %s842_s9 = scalar_lea.sflag [#allocation3], %s841_s8 }
 0x16d   : > { %p905_p2 = pnand %p908_p1, %p1111_p6 }
 0x16f   : > { %999 = dma.done.wait (!%p905_p2), %s842_s9, 128  }
 0x170   : > { %1001 = vsyncadd (!%p905_p2), %s842_s9, 4294967168  ;;  %p17_p3 = scmp.ge.s32.totalorder %s1094_s30, 4   ;;  %s1425_s24 = smov %s1008_s25 }
 0x171   : > { %s1426_s25 = smov %s1012_s26  ;;  %s1427_s26 = smov %s1105_s10 }
 0x172   : > { %s1428_s27 = smov %s1094_s30  ;;  %19 = sbr.rel (!%p17_p3) target bundleno = 3 (0x3), region = 83 }
 0x179   :  { %847 = vsyncpa [#allocation3], 1 }
 0x17a   :  { %849 = vsyncpa [#allocation3 + $0x1], 1 }

</bundles_post_ra>
